<compile_context>
chip_gen: v5e
topology: v5e:2x2
jax: 0.10.0
libtpu: 0.0.40
codegen_flags: <defaults>
</compile_context>

<pallas_src>
import functools

import jax
import jax.numpy as jnp
from jax.experimental import pallas as pl
from jax.experimental.pallas import tpu as pltpu


def _round_up(x, m):
    return ((x + m - 1) // m) * m


def _prodnet_kernel(num_layers, mxu_dtype, x_ref, *refs):
    """refs = (w0, b0, w1, b1, ..., wL, bL, out_ref).

    The whole MLP (all matmuls + ReLUs) runs inside the kernel for one batch
    tile; layer count is static, so the Python loop unrolls at trace time.
    """
    out_ref = refs[-1]
    params = refs[:-1]
    h = x_ref[...]                              # (block_rows, in_Np), mxu_dtype
    for li in range(num_layers):
        w = params[2 * li][...]                 # (d_in_p, d_out_p), mxu_dtype
        b = params[2 * li + 1][...]             # (1, d_out_p), f32
        # MXU matmul in mxu_dtype, f32 accumulation; bias add / ReLU in f32.
        h = jnp.dot(h.astype(mxu_dtype), w,
                    preferred_element_type=jnp.float32) + b
        if li < num_layers - 1:
            h = jnp.maximum(h, 0.0)             # .clamp(min=0)
    out_ref[...] = h.astype(out_ref.dtype)


def prodnet_forward(x, weights, biases, *, block_rows=512,
                    mxu_dtype=jnp.bfloat16):
    """x: (N, in_N) f32; weights[i]: (d_out, d_in) (PyTorch nn.Linear layout)."""
    N, in_N = x.shape
    out_N = weights[-1].shape[0]
    num_layers = len(weights)

    # Per-layer feature dims, padded to 128-lane multiples.
    dims = [in_N] + [int(w.shape[0]) for w in weights]
    dims_p = [_round_up(d, 128) for d in dims]

    # Batch tile: large enough to amortize per-grid-step overhead, clamped to N.
    block_rows = max(8, min(block_rows, _round_up(N, 8)))

    mxu_bytes = jnp.dtype(mxu_dtype).itemsize

    def vmem_estimate(br):
        est = 2 * br * dims_p[0] * mxu_bytes            # x tile (double buffered)
        est += 2 * br * dims_p[-1] * 4                  # out tile (double buffered)
        for di, do in zip(dims_p[:-1], dims_p[1:]):
            est += 2 * di * do * mxu_bytes + 2 * do * 4  # weights + biases
        est += 2 * br * max(dims_p) * 4                 # two live activation slabs
        return est

    # Conservative budget (v7x has only 64 MiB VMEM per TensorCore).
    budget = 48 << 20
    while block_rows > 8 and vmem_estimate(block_rows) > budget:
        block_rows = max(8, _round_up(block_rows // 2, 8))
    # TODO(synk): for large in_N (mid_N = 6*in_N) the full weights no longer fit
    # VMEM on any generation; that needs per-layer d_out tiling (inner
    # emit_pipeline over weight column blocks) or HBM-resident weights with
    # manual double-buffered DMA. Not needed at these shapes.
    if vmem_estimate(block_rows) > budget:
        raise NotImplementedError(
            "weights too large for a VMEM-resident kernel; add per-layer tiling")

    Np = _round_up(N, block_rows)

    # Glue: pad x / weights / biases. Weights are transposed to (d_in, d_out)
    # so the kernel does h @ W (MXU-friendly); biases become (1, d_out_p).
    x_p = jnp.zeros((Np, dims_p[0]), mxu_dtype).at[:N, :in_N].set(
        jnp.asarray(x, jnp.float32).astype(mxu_dtype))
    wts, bs = [], []
    for li, (w, b) in enumerate(zip(weights, biases)):
        di, do = dims[li], dims[li + 1]
        dip, dop = dims_p[li], dims_p[li + 1]
        w_p = jnp.zeros((dip, dop), mxu_dtype).at[:di, :do].set(
            jnp.asarray(w, jnp.float32).T.astype(mxu_dtype))
        b_p = jnp.zeros((1, dop), jnp.float32).at[0, :do].set(
            jnp.asarray(b, jnp.float32))
        wts.append(w_p)
        bs.append(b_p)

    grid = (Np // block_rows,)
    in_specs = [pl.BlockSpec((block_rows, dims_p[0]), lambda i: (i, 0))]
    args = [x_p]
    for w_p, b_p in zip(wts, bs):
        # Full-array blocks with a constant index_map: the pipeline never
        # re-fetches these across grid steps. (At these parameter sizes the
        # extra pipeline buffer is negligible; at large mid_N single-buffer the
        # params or keep them HBM-resident.)
        in_specs.append(pl.BlockSpec(w_p.shape, lambda i: (0, 0)))
        in_specs.append(pl.BlockSpec(b_p.shape, lambda i: (0, 0)))
        args.append(w_p)
        args.append(b_p)

    # Lane-dense output block (last dim is a multiple of 128): unmasked stores.
    out_spec = pl.BlockSpec((block_rows, dims_p[-1]), lambda i: (i, 0))

    vmem_limit = int(min(max(2 * vmem_estimate(block_rows), 32 << 20), 64 << 20))

    kernel = functools.partial(_prodnet_kernel, num_layers, mxu_dtype)
    out_p = pl.pallas_call(
        kernel,
        grid=grid,
        in_specs=in_specs,
        out_specs=out_spec,
        out_shape=jax.ShapeDtypeStruct((Np, dims_p[-1]), jnp.float32),
        compiler_params=pltpu.CompilerParams(
            dimension_semantics=("parallel",),
            vmem_limit_bytes=vmem_limit),
    )(*args)
    # Strip batch and lane padding outside the kernel.
    return out_p[:N, :out_N]


def make_params(key, in_N, num_L):
    """Deterministic parameter init matching ProdNet.__init__ shapes."""
    if in_N % 2 == 0:
        mid_N = 6 * in_N
        out_N = in_N // 2
    else:
        mid_N = 6 * (in_N - 1) + 2
        out_N = in_N // 2 + 1
    dims = [in_N] + [mid_N] * num_L + [out_N]
    weights, biases = [], []
    for li in range(len(dims) - 1):
        key, kw, kb = jax.random.split(key, 3)
        fan_in, fan_out = dims[li], dims[li + 1]
        bound = 1.0 / (fan_in ** 0.5)  # mimics torch.nn.Linear default init
        weights.append(
            jax.random.uniform(kw, (fan_out, fan_in), jnp.float32, -bound, bound))
        biases.append(
            jax.random.uniform(kb, (fan_out,), jnp.float32, -bound, bound))
    return weights, biases


if __name__ == "__main__":
    in_N, num_L = 4, 3          # even in_N -> mid_N = 24, out_N = 2
    a, b = -1.0, 1.0
    N = 16                      # sample points

    key = jax.random.PRNGKey(0)
    kx, kp = jax.random.split(key)
    x = jax.random.uniform(kx, (N, in_N), jnp.float32, a, b)
    weights, biases = make_params(kp, in_N, num_L)

    out = prodnet_forward(x, weights, biases)
    jax.block_until_ready(out)

    # Plain-JAX f32 reference of the exact same forward, for a sanity check.
    # (Kernel uses bf16 MXU operands, so tolerances are loosened accordingly.)
    h = x
    for li, (w, bb) in enumerate(zip(weights, biases)):
        h = h @ w.T + bb
        if li < len(weights) - 1:
            h = jnp.maximum(h, 0.0)
    assert out.shape == (N, weights[-1].shape[0])
    assert jnp.allclose(out, h, atol=5e-2, rtol=5e-2), (
        float(jnp.max(jnp.abs(out - h))))
    print("KERNEL_OK")
</pallas_src>

<mosaic_0001>
module attributes {stable_mosaic.version = 11 : i64} {
  func.func @_prodnet_kernel(%arg0: i32, %arg1: memref<16x128xbf16, #tpu.memory_space<vmem>>, %arg2: memref<128x128xbf16, #tpu.memory_space<vmem>>, %arg3: memref<1x128xf32, #tpu.memory_space<vmem>>, %arg4: memref<128x128xbf16, #tpu.memory_space<vmem>>, %arg5: memref<1x128xf32, #tpu.memory_space<vmem>>, %arg6: memref<128x128xbf16, #tpu.memory_space<vmem>>, %arg7: memref<1x128xf32, #tpu.memory_space<vmem>>, %arg8: memref<128x128xbf16, #tpu.memory_space<vmem>>, %arg9: memref<1x128xf32, #tpu.memory_space<vmem>>, %arg10: memref<16x128xf32, #tpu.memory_space<vmem>>) attributes {dimension_semantics = [#tpu.dimension_semantics<parallel>], iteration_bounds = array<i64: 1>, scalar_prefetch = 0 : i64, scratch_operands = 0 : i64, tpu.core_type = #tpu.core_type<tc>, window_params = [{transform_indices = @transform_0, window_bounds = array<i64: 16, 128>}, {pipeline_mode = #tpu.pipeline_mode<synchronous>, transform_indices = @transform_1, window_bounds = array<i64: 128, 128>}, {pipeline_mode = #tpu.pipeline_mode<synchronous>, transform_indices = @transform_2, window_bounds = array<i64: 1, 128>}, {pipeline_mode = #tpu.pipeline_mode<synchronous>, transform_indices = @transform_3, window_bounds = array<i64: 128, 128>}, {pipeline_mode = #tpu.pipeline_mode<synchronous>, transform_indices = @transform_4, window_bounds = array<i64: 1, 128>}, {pipeline_mode = #tpu.pipeline_mode<synchronous>, transform_indices = @transform_5, window_bounds = array<i64: 128, 128>}, {pipeline_mode = #tpu.pipeline_mode<synchronous>, transform_indices = @transform_6, window_bounds = array<i64: 1, 128>}, {pipeline_mode = #tpu.pipeline_mode<synchronous>, transform_indices = @transform_7, window_bounds = array<i64: 128, 128>}, {pipeline_mode = #tpu.pipeline_mode<synchronous>, transform_indices = @transform_8, window_bounds = array<i64: 1, 128>}, {transform_indices = @transform_9, window_bounds = array<i64: 16, 128>}]} {
    %c0 = arith.constant 0 : index
    %c0_0 = arith.constant 0 : index
    %0 = vector.load %arg1[%c0, %c0_0] : memref<16x128xbf16, #tpu.memory_space<vmem>>, vector<16x128xbf16>
    %c0_1 = arith.constant 0 : index
    %c0_2 = arith.constant 0 : index
    %1 = vector.load %arg2[%c0_1, %c0_2] : memref<128x128xbf16, #tpu.memory_space<vmem>>, vector<128x128xbf16>
    %c0_3 = arith.constant 0 : index
    %c0_4 = arith.constant 0 : index
    %2 = vector.load %arg3[%c0_3, %c0_4] : memref<1x128xf32, #tpu.memory_space<vmem>>, vector<1x128xf32>
    %cst = arith.constant dense<0.000000e+00> : vector<16x128xf32>
    %3 = tpu.matmul %0, %1, %cst {dimension_numbers = #tpu.dot_dimension_numbers<[1], [0], [0], [1], [0, 0, 1, 1], [], []>} : vector<16x128xbf16>, vector<128x128xbf16>, vector<16x128xf32> -> vector<16x128xf32>
    %4 = vector.broadcast %2 : vector<1x128xf32> to vector<16x128xf32>
    %5 = arith.addf %3, %4 : vector<16x128xf32>
    %cst_5 = arith.constant 0.000000e+00 : f32
    %6 = vector.broadcast %cst_5 : f32 to vector<16x128xf32>
    %7 = arith.maximumf %5, %6 : vector<16x128xf32>
    %c0_6 = arith.constant 0 : index
    %c0_7 = arith.constant 0 : index
    %8 = vector.load %arg4[%c0_6, %c0_7] : memref<128x128xbf16, #tpu.memory_space<vmem>>, vector<128x128xbf16>
    %c0_8 = arith.constant 0 : index
    %c0_9 = arith.constant 0 : index
    %9 = vector.load %arg5[%c0_8, %c0_9] : memref<1x128xf32, #tpu.memory_space<vmem>>, vector<1x128xf32>
    %10 = arith.truncf %7 : vector<16x128xf32> to vector<16x128xbf16>
    %cst_10 = arith.constant dense<0.000000e+00> : vector<16x128xf32>
    %11 = tpu.matmul %10, %8, %cst_10 {dimension_numbers = #tpu.dot_dimension_numbers<[1], [0], [0], [1], [0, 0, 1, 1], [], []>} : vector<16x128xbf16>, vector<128x128xbf16>, vector<16x128xf32> -> vector<16x128xf32>
    %12 = vector.broadcast %9 : vector<1x128xf32> to vector<16x128xf32>
    %13 = arith.addf %11, %12 : vector<16x128xf32>
    %cst_11 = arith.constant 0.000000e+00 : f32
    %14 = vector.broadcast %cst_11 : f32 to vector<16x128xf32>
    %15 = arith.maximumf %13, %14 : vector<16x128xf32>
    %c0_12 = arith.constant 0 : index
    %c0_13 = arith.constant 0 : index
    %16 = vector.load %arg6[%c0_12, %c0_13] : memref<128x128xbf16, #tpu.memory_space<vmem>>, vector<128x128xbf16>
    %c0_14 = arith.constant 0 : index
    %c0_15 = arith.constant 0 : index
    %17 = vector.load %arg7[%c0_14, %c0_15] : memref<1x128xf32, #tpu.memory_space<vmem>>, vector<1x128xf32>
    %18 = arith.truncf %15 : vector<16x128xf32> to vector<16x128xbf16>
    %cst_16 = arith.constant dense<0.000000e+00> : vector<16x128xf32>
    %19 = tpu.matmul %18, %16, %cst_16 {dimension_numbers = #tpu.dot_dimension_numbers<[1], [0], [0], [1], [0, 0, 1, 1], [], []>} : vector<16x128xbf16>, vector<128x128xbf16>, vector<16x128xf32> -> vector<16x128xf32>
    %20 = vector.broadcast %17 : vector<1x128xf32> to vector<16x128xf32>
    %21 = arith.addf %19, %20 : vector<16x128xf32>
    %cst_17 = arith.constant 0.000000e+00 : f32
    %22 = vector.broadcast %cst_17 : f32 to vector<16x128xf32>
    %23 = arith.maximumf %21, %22 : vector<16x128xf32>
    %c0_18 = arith.constant 0 : index
    %c0_19 = arith.constant 0 : index
    %24 = vector.load %arg8[%c0_18, %c0_19] : memref<128x128xbf16, #tpu.memory_space<vmem>>, vector<128x128xbf16>
    %c0_20 = arith.constant 0 : index
    %c0_21 = arith.constant 0 : index
    %25 = vector.load %arg9[%c0_20, %c0_21] : memref<1x128xf32, #tpu.memory_space<vmem>>, vector<1x128xf32>
    %26 = arith.truncf %23 : vector<16x128xf32> to vector<16x128xbf16>
    %cst_22 = arith.constant dense<0.000000e+00> : vector<16x128xf32>
    %27 = tpu.matmul %26, %24, %cst_22 {dimension_numbers = #tpu.dot_dimension_numbers<[1], [0], [0], [1], [0, 0, 1, 1], [], []>} : vector<16x128xbf16>, vector<128x128xbf16>, vector<16x128xf32> -> vector<16x128xf32>
    %28 = vector.broadcast %25 : vector<1x128xf32> to vector<16x128xf32>
    %29 = arith.addf %27, %28 : vector<16x128xf32>
    %c0_23 = arith.constant 0 : index
    %c0_24 = arith.constant 0 : index
    %30 = vector.load %arg10[%c0_23, %c0_24] : memref<16x128xf32, #tpu.memory_space<vmem>>, vector<16x128xf32>
    tpu.vector_store %arg10[%c0_23, %c0_24], %29 {strides = array<i32>} : memref<16x128xf32, #tpu.memory_space<vmem>>, vector<16x128xf32>,
    return
  }
  func.func @transform_0(%arg0: i32) -> (i32, i32) {
    %c0_i32 = arith.constant 0 : i32
    %c0_i32_0 = arith.constant 0 : i32
    return %arg0, %c0_i32 : i32, i32
  }
  func.func @transform_1(%arg0: i32) -> (i32, i32) {
    %c0_i32 = arith.constant 0 : i32
    %c0_i32_0 = arith.constant 0 : i32
    %c0_i32_1 = arith.constant 0 : i32
    return %c0_i32, %c0_i32_0 : i32, i32
  }
  func.func @transform_2(%arg0: i32) -> (i32, i32) {
    %c0_i32 = arith.constant 0 : i32
    %c0_i32_0 = arith.constant 0 : i32
    %c0_i32_1 = arith.constant 0 : i32
    return %c0_i32, %c0_i32_0 : i32, i32
  }
  func.func @transform_3(%arg0: i32) -> (i32, i32) {
    %c0_i32 = arith.constant 0 : i32
    %c0_i32_0 = arith.constant 0 : i32
    %c0_i32_1 = arith.constant 0 : i32
    return %c0_i32, %c0_i32_0 : i32, i32
  }
  func.func @transform_4(%arg0: i32) -> (i32, i32) {
    %c0_i32 = arith.constant 0 : i32
    %c0_i32_0 = arith.constant 0 : i32
    %c0_i32_1 = arith.constant 0 : i32
    return %c0_i32, %c0_i32_0 : i32, i32
  }
  func.func @transform_5(%arg0: i32) -> (i32, i32) {
    %c0_i32 = arith.constant 0 : i32
    %c0_i32_0 = arith.constant 0 : i32
    %c0_i32_1 = arith.constant 0 : i32
    return %c0_i32, %c0_i32_0 : i32, i32
  }
  func.func @transform_6(%arg0: i32) -> (i32, i32) {
    %c0_i32 = arith.constant 0 : i32
    %c0_i32_0 = arith.constant 0 : i32
    %c0_i32_1 = arith.constant 0 : i32
    return %c0_i32, %c0_i32_0 : i32, i32
  }
  func.func @transform_7(%arg0: i32) -> (i32, i32) {
    %c0_i32 = arith.constant 0 : i32
    %c0_i32_0 = arith.constant 0 : i32
    %c0_i32_1 = arith.constant 0 : i32
    return %c0_i32, %c0_i32_0 : i32, i32
  }
  func.func @transform_8(%arg0: i32) -> (i32, i32) {
    %c0_i32 = arith.constant 0 : i32
    %c0_i32_0 = arith.constant 0 : i32
    %c0_i32_1 = arith.constant 0 : i32
    return %c0_i32, %c0_i32_0 : i32, i32
  }
  func.func @transform_9(%arg0: i32) -> (i32, i32) {
    %c0_i32 = arith.constant 0 : i32
    %c0_i32_0 = arith.constant 0 : i32
    return %arg0, %c0_i32 : i32, i32
  }
}

</mosaic_0001>

<bundles_post_ra>
// kernel: tpu_custom_call.1
= control target key start
LH: loop header
LB: loop body
LE: loop exit
PB: predicated region body
PF: predicated region fallthrough
CT: control target
= control target key end

     0   :  { %14 = vsyncpa [#allocation3], 0  ;;  %s900_s0 = inlined_call_operand.hbm [shape: bf16[16,128], index: 0, kind: input, shape index: {}]   ;;  %s901_s1 = inlined_call_operand.hbm [shape: bf16[128,128], index: 1, kind: input, shape index: {}]   ;;  %s902_s2 = inlined_call_operand.vmem [shape: f32[1,128], index: 2, kind: input, shape index: {}]   ;;  %s903_s3 = inlined_call_operand.hbm [shape: bf16[128,128], index: 3, kind: input, shape index: {}]   ;;  %s904_s4 = inlined_call_operand.vmem [shape: f32[1,128], index: 4, kind: input, shape index: {}]   ;;  %s905_s5 = inlined_call_operand.hbm [shape: bf16[128,128], index: 5, kind: input, shape index: {}]   ;;  %s906_s6 = inlined_call_operand.vmem [shape: f32[1,128], index: 6, kind: input, shape index: {}]   ;;  %s907_s7 = inlined_call_operand.hbm [shape: bf16[128,128], index: 7, kind: input, shape index: {}]   ;;  %s908_s8 = inlined_call_operand.vmem [shape: f32[1,128], index: 8, kind: input, shape index: {}]   ;;  %s909_s9 = inlined_call_operand.hbm [shape: f32[16,128], index: 9, kind: output, shape index: {}]  }
   0x1   :  { %15 = vsyncpa [#allocation6], 0 }
   0x2   :  { %16 = vsyncpa [#allocation9], 0 }
   0x3   :  { %17 = vsyncpa [#allocation4], 0  ;;  %s35_s11 = sshll.u32 %s901_s1, 4  ;;  %s810_s12 = smov [#allocation5]   ;;  %s36_s11 = int_to_ptr.hbm [resolvable:$true] %s35_s11 }
   0x4   :  { %s37_s13 = sshll.u32 %s810_s12, 4  ;;  %s65_s16 = sshll.u32 %s905_s5, 4  ;;  %s38_s13 = int_to_ptr.vmem [resolvable:$true] %s37_s13  ;;  %s66_s16 = int_to_ptr.hbm [resolvable:$true] %s65_s16 }
   0x5   :  { %s811_s17 = smov 64   ;;  %s812_s18 = smov 4  }
   0x6   :  { %43 = dma.hbm_to_vmem [thread:$0]  %s36_s11, 1024, %s38_s13, [#allocation6], %s811_s17, %s811_s17, %s812_s18  }
   0x7   :  { %s813_s19 = smov [#allocation8]   ;;  %s22_s23 = sshll.u32 %s900_s0, 4  ;;  %s23_s23 = int_to_ptr.hbm [resolvable:$true] %s22_s23 }
   0x8   :  { %s67_s20 = sshll.u32 %s813_s19, 4  ;;  %s50_s25 = sshll.u32 %s903_s3, 4  ;;  %s68_s20 = int_to_ptr.vmem [resolvable:$true] %s67_s20  ;;  %s51_s25 = int_to_ptr.hbm [resolvable:$true] %s50_s25 }
   0x9   :  { %73 = dma.hbm_to_vmem [thread:$0]  %s66_s16, 1024, %s68_s20, [#allocation9], %s811_s17, %s811_s17, %s812_s18  }
   0xa   :  { %s814_s26 = smov [#allocation2]   ;;  %s815_s5 = smov [#allocation7]  }
   0xb   :  { %s24_s27 = sshll.u32 %s814_s26, 4  ;;  %s52_s28 = sshll.u32 %s815_s5, 4  ;;  %s25_s27 = int_to_ptr.vmem [resolvable:$true] %s24_s27  ;;  %s53_s28 = int_to_ptr.vmem [resolvable:$true] %s52_s28 }
   0xc   :  { %30 = dma.hbm_to_vmem [thread:$0]  %s23_s23, 128, %s25_s27, [#allocation3], %s811_s17, %s811_s17, %s812_s18  }
   0xd   :  { %s80_s10 = sshll.u32 %s907_s7, 4  ;;  %s816_s0 = smov [#allocation10]   ;;  %s81_s10 = int_to_ptr.hbm [resolvable:$true] %s80_s10 }
   0xe   :  { %58 = dma.hbm_to_vmem [thread:$0]  %s51_s25, 1024, %s53_s28, [#allocation6], %s811_s17, %s811_s17, %s812_s18  }
   0xf   :  { %s82_s11 = sshll.u32 %s816_s0, 4  ;;  %s83_s11 = int_to_ptr.vmem [resolvable:$true] %s82_s11 }
  0x10   :  { %88 = dma.hbm_to_vmem [thread:$0]  %s81_s10, 1024, %s83_s11, [#allocation9], %s811_s17, %s811_s17, %s812_s18  }
  0x11   :  { %802 = dma.done.wait [#allocation3], 128  }
  0x12   :  { %803 = vsyncadd [#allocation3], 4294967168 }
  0x13   :  { %804 = dma.done.wait [#allocation6], 2048  }
  0x14   :  { %805 = vsyncadd [#allocation6], 4294965248 }
  0x15   :  { %806 = dma.done.wait [#allocation9], 2048  }
  0x16   :  { %807 = vsyncadd [#allocation9], 4294965248  ;;  %v619_v0 = vld [vmem:[#allocation5 + $0x38] sm:$0xff]  ;;  %v618_v1 = vld [vmem:[#allocation5 + $0x30] sm:$0xff]  ;;  %s817_s16 = smov [#allocation11]   ;;  %s818_s20 = smov 128  }
  0x17   :  { %187 = vmatpush.bf16.msra.mxu0 %v619_v0  ;;  %v627_v2 = vld [vmem:[#allocation7 + $0x38] sm:$0xff]  ;;  %v626_v3 = vld [vmem:[#allocation7 + $0x30] sm:$0xff]  ;;  %v617_v4 = vld [vmem:[#allocation5 + $0x28] sm:$0xff]  ;;  %s462_s17 = sshll.u32 %s817_s16, 4  ;;  %s819_s21 = smov 8   ;;  %s463_s17 = int_to_ptr.vmem [resolvable:$true] %s462_s17 }
  0x18   :  { %272 = vmatpush.bf16.msra.mxu1 %v627_v2  ;;  %v625_v5 = vld [vmem:[#allocation7 + $0x28] sm:$0xff]  ;;  %v616_v6 = vld [vmem:[#allocation5 + $0x20] sm:$0xff]  ;;  %v615_v8 = vld [vmem:[#allocation5 + $0x18] sm:$0xff] }
  0x19   :  { %v624_v7 = vld [vmem:[#allocation7 + $0x20] sm:$0xff]  ;;  %v614_v9 = vld [vmem:[#allocation5 + $0x10] sm:$0xff]  ;;  %v613_v10 = vld [vmem:[#allocation5 + $0x8] sm:$0xff] }
  0x1a   :  { %v612_v11 = vld [vmem:[#allocation5] sm:$0xff]  ;;  %v611_v12 = vld [vmem:[#allocation2] sm:$0xff]  ;;  %v622_v14 = vld [vmem:[#allocation7 + $0x10] sm:$0xff] }
  0x1b   :  { %188 = vmatpush.bf16.msra.mxu0 %v618_v1  ;;  %v623_v13 = vld [vmem:[#allocation7 + $0x18] sm:$0xff]  ;;  %v621_v15 = vld [vmem:[#allocation7 + $0x8] sm:$0xff]  ;;  %v620_v16 = vld [vmem:[#allocation7] sm:$0xff] }
  0x1c   :  { %273 = vmatpush.bf16.msra.mxu1 %v626_v3  ;;  %v635_v17 = vld [vmem:[#allocation8 + $0x38] sm:$0xff]  ;;  %v634_v18 = vld [vmem:[#allocation8 + $0x30] sm:$0xff]  ;;  %v633_v19 = vld [vmem:[#allocation8 + $0x28] sm:$0xff] }
  0x1d   :  { %357 = vmatpush.bf16.msra.mxu2 %v635_v17  ;;  %v632_v20 = vld [vmem:[#allocation8 + $0x20] sm:$0xff]  ;;  %v654_v22 = vld [vmem:[%s902_s2] ss:$0 sm:$0xff]  ;;  %v630_v30 = vld [vmem:[#allocation8 + $0x10] sm:$0xff] }
  0x1e   :  { %v631_v29 = vld [vmem:[#allocation8 + $0x18] sm:$0xff]  ;;  %v629_v31 = vld [vmem:[#allocation8 + $0x8] sm:$0xff]  ;;  %v628_v32 = vld [vmem:[#allocation8] sm:$0xff] }
  0x1f   :  { %189 = vmatpush.bf16.msra.mxu0 %v617_v4  ;;  %v643_v33 = vld [vmem:[#allocation10 + $0x38] sm:$0xff]  ;;  %v642_v34 = vld [vmem:[#allocation10 + $0x30] sm:$0xff]  ;;  %v641_v35 = vld [vmem:[#allocation10 + $0x28] sm:$0xff] }
  0x20   :  { %274 = vmatpush.bf16.msra.mxu1 %v625_v5  ;;  %442 = vmatpush.bf16.msra.mxu3 %v643_v33  ;;  %v640_v36 = vld [vmem:[#allocation10 + $0x20] sm:$0xff]  ;;  %v655_v38 = vld [vmem:[%s904_s4] ss:$0 sm:$0xff]  ;;  %v638_v46 = vld [vmem:[#allocation10 + $0x10] sm:$0xff] }
  0x21   :  { %358 = vmatpush.bf16.msra.mxu2 %v634_v18  ;;  %v639_v45 = vld [vmem:[#allocation10 + $0x18] sm:$0xff]  ;;  %v637_v47 = vld [vmem:[#allocation10 + $0x8] sm:$0xff]  ;;  %v636_v48 = vld [vmem:[#allocation10] sm:$0xff] }
  0x22   :  { %v656_v50 = vld [vmem:[%s906_s6] ss:$0 sm:$0xff]  ;;  %s464_s6 = sshll.u32 %s909_s9, 4  ;;  %s465_s6 = int_to_ptr.hbm [resolvable:$true] %s464_s6 }
  0x23   :  { %190 = vmatpush.bf16.msra.mxu0 %v616_v6  ;;  %v657_v57 = vld [vmem:[%s908_s8] ss:$0 sm:$0xff] }
  0x24   :  { %275 = vmatpush.bf16.msra.mxu1 %v624_v7  ;;  %443 = vmatpush.bf16.msra.mxu3 %v642_v34 }
  0x25   :  { %359 = vmatpush.bf16.msra.mxu2 %v633_v19 }
  0x27   :  { %191 = vmatpush.bf16.msra.mxu0 %v615_v8 }
  0x28   :  { %276 = vmatpush.bf16.msra.mxu1 %v623_v13  ;;  %444 = vmatpush.bf16.msra.mxu3 %v641_v35 }
  0x29   :  { %360 = vmatpush.bf16.msra.mxu2 %v632_v20 }
  0x2b   :  { %192 = vmatpush.bf16.msra.mxu0 %v614_v9 }
  0x2c   :  { %277 = vmatpush.bf16.msra.mxu1 %v622_v14  ;;  %445 = vmatpush.bf16.msra.mxu3 %v640_v36 }
  0x2d   :  { %361 = vmatpush.bf16.msra.mxu2 %v631_v29 }
  0x2f   :  { %193 = vmatpush.bf16.msra.mxu0 %v613_v10 }
  0x30   :  { %278 = vmatpush.bf16.msra.mxu1 %v621_v15  ;;  %446 = vmatpush.bf16.msra.mxu3 %v639_v45 }
  0x31   :  { %362 = vmatpush.bf16.msra.mxu2 %v630_v30 }
  0x33   :  { %194 = vmatpush.bf16.msra.mxu0 %v612_v11 }
  0x34   :  { %279 = vmatpush.bf16.msra.mxu1 %v620_v16  ;;  %447 = vmatpush.bf16.msra.mxu3 %v638_v46 }
  0x35   :  { %363 = vmatpush.bf16.msra.mxu2 %v629_v31 }
  0x36   :  { %195 = vmatmul.bf16.vlgmr.msra.gmra.mxu0 %v611_v12 }
  0x38   :  { %448 = vmatpush.bf16.msra.mxu3 %v637_v47 }
  0x39   :  { %364 = vmatpush.bf16.msra.mxu2 %v628_v32 }
  0x3c   :  { %449 = vmatpush.bf16.msra.mxu3 %v636_v48 }
  0xb3   :  { %v196_v21 = vpop.f32.mrf.mxu0 }
  0xb4   :  { %v197_v23 = vadd.f32 %v654_v22, %v196_v21 }
  0xb6   :  { %v201_v26 = vmax.f32 %v197_v23, 0.0 }
  0xbb   :  { %v198_v24 = vpop.f32.mrf.mxu0 }
  0xbc   :  { %v199_v25 = vadd.f32 %v654_v22, %v198_v24 }
  0xbe   :  { %v202_v27 = vmax.f32 %v199_v25, 0.0 }
  0xc0   :  { %v220_v28 = vpack.c.bf16 %v202_v27, %v201_v26 }
  0xc2   :  { %280 = vmatmul.bf16.vlgmr.msra.gmra.mxu1 %v220_v28 }
 0x13f   :  { %v281_v37 = vpop.f32.mrf.mxu1 }
 0x140   :  { %v282_v39 = vadd.f32 %v655_v38, %v281_v37 }
 0x142   :  { %v286_v42 = vmax.f32 %v282_v39, 0.0 }
 0x147   :  { %v283_v40 = vpop.f32.mrf.mxu1 }
 0x148   :  { %v284_v41 = vadd.f32 %v655_v38, %v283_v40 }
 0x14a   :  { %v287_v43 = vmax.f32 %v284_v41, 0.0 }
 0x14c   :  { %v305_v44 = vpack.c.bf16 %v287_v43, %v286_v42 }
 0x14e   :  { %365 = vmatmul.bf16.vlgmr.msra.gmra.mxu2 %v305_v44 }
 0x1d1   :  { %v366_v49 = vpop.f32.mrf.mxu2 }
 0x1d2   :  { %v367_v51 = vadd.f32 %v656_v50, %v366_v49 }
 0x1d4   :  { %v371_v54 = vmax.f32 %v367_v51, 0.0 }
 0x1d9   :  { %v368_v52 = vpop.f32.mrf.mxu2 }
 0x1da   :  { %v369_v53 = vadd.f32 %v656_v50, %v368_v52 }
 0x1dc   :  { %v372_v55 = vmax.f32 %v369_v53, 0.0 }
 0x1de   :  { %v390_v56 = vpack.c.bf16 %v372_v55, %v371_v54 }
 0x1e0   :  { %450 = vmatmul.bf16.vlgmr.msra.gmra.mxu3 %v390_v56 }
 0x263   :  { %v451_v58 = vpop.f32.mrf.mxu3 }
 0x264   :  { %v452_v59 = vadd.f32 %v657_v57, %v451_v58 }
 0x266   :  { %456 = vst [vmem:[#allocation11] sm:$0xff] %v452_v59 }
 0x26b   :  { %v453_v60 = vpop.f32.mrf.mxu3 }
 0x26c   :  { %v454_v61 = vadd.f32 %v657_v57, %v453_v60 }
 0x26e   :  { %457 = vst [vmem:[#allocation11 + $0x8] sm:$0xff] %v454_v61 }
 0x26f   :  { %470 = dma.vmem_to_hbm [thread:$0]  %s463_s17, 256, %s465_s6, [#allocation4], %s818_s20, %s818_s20, %s819_s21  }
 0x270   :  { %808 = dma.done.wait [#allocation4], 256  }
 0x271   :  { %809 = vsyncadd [#allocation4], 4294967040 }
 0x272   :  { %475 = vsyncpa [#allocation3], 1 }
 0x273   :  { %476 = vsyncpa [#allocation6], 1 }
 0x274   :  { %477 = vsyncpa [#allocation9], 1 }
 0x275   :  { %478 = vsyncpa [#allocation4], 1 }

</bundles_post_ra>
